<compile_context>
chip_gen: v5e
topology: v5e:2x2
jax: 0.10.0
libtpu: 0.0.40
codegen_flags: <defaults>
</compile_context>

<pallas_src>
import jax
import jax.numpy as jnp
from jax.experimental import pallas as pl
from jax.experimental.pallas import tpu as pltpu


def _round_up(x, m):
    return ((x + m - 1) // m) * m


def _vmem_capacity_bytes():
    """Physical VMEM of the current chip; conservative v7x default on failure."""
    try:
        return int(pltpu.get_tpu_info().vmem_capacity_bytes)
    except Exception:
        return 64 * 1024 * 1024


def fourth_order_kernel(x_ref, w1t_ref, w2t_ref, y_ref):
    # Cast the activation tile to the MXU operand dtype in-kernel (x stays in
    # its original dtype in HBM -> no wrapper-side astype pass).
    x = x_ref[...].astype(w1t_ref.dtype)
    # Hidden layer on the MXU, f32 accumulation: [tn, D_in_p] @ [D_in_p, H_p].
    h = jnp.dot(x, w1t_ref[...], preferred_element_type=jnp.float32)
    # Fourth power in f32 on the VPU (numerically safe; hidden under MXU work),
    # then cast to the MXU operand dtype for the second matmul.
    h2 = h * h
    h4 = (h2 * h2).astype(w2t_ref.dtype)
    # Output layer: [tn, H_p] @ [H_p, tile_no] -> f32, cast to output dtype.
    y = jnp.dot(h4, w2t_ref[...], preferred_element_type=jnp.float32)
    y_ref[...] = y.astype(y_ref.dtype)


def _choose_plan(n, d_in_p, h_p, d_out_p0, x_isize, o_isize, c_isize,
                 row_tile, budget):
    """Pick (tile_n, tile_no, n_col, plan_bytes) so the VMEM plan fits `budget`.

    Priority: shrink the row tile first (halves the f32 h/h2/h4 temporaries),
    then split the output columns (which re-computes h per column tile), then
    shrink rows further.
    """
    # Row-tile heuristic: >=2 row tiles when N allows, < one tile of padding.
    tn0 = max(16, _round_up(pl.cdiv(n, max(2, pl.cdiv(n, row_tile))), 16))

    def plan_bytes(tn, t_no, n_col):
        w2_bufs = 1 if n_col == 1 else 2      # resident slab vs. pipelined tile
        return (2 * tn * d_in_p * x_isize     # x row tiles (double-buffered)
                + 2 * tn * t_no * o_isize     # y tiles (double-buffered)
                + 1 * d_in_p * h_p * c_isize  # W1^T slab (single-buffered)
                + w2_bufs * h_p * t_no * c_isize   # W2^T slab / column tile
                + 3 * tn * h_p * 4)           # f32 h / h2 / h4 temporaries

    best = None
    for tn_floor in (128, 16):
        for n_col in (1, 2, 4, 8, 16, 32, 64):
            t_no = _round_up(pl.cdiv(d_out_p0, n_col), 128)
            tn = tn0
            while True:
                b = plan_bytes(tn, t_no, n_col)
                if best is None or b < best[3]:
                    best = (tn, t_no, n_col, b)
                if b <= budget:
                    return tn, t_no, n_col, b
                if tn <= tn_floor:
                    break
                tn = max(tn_floor, _round_up(tn // 2, 16))
    # Nothing fits the budget: return the smallest plan found and let the
    # compiler's scoped-VMEM limit arbitrate.
    return best


def fourth_order_net(x, w1, w2, *, compute_dtype=jnp.bfloat16, row_tile=256):
    """FourthOrderNet forward: y = ((x @ w1.T) ** 4) @ w2.T

    x: [N, D_in]; w1: [H, D_in]; w2: [D_out, H]  (PyTorch nn.Linear layout,
    bias=False).  bf16 MXU operands + f32 accumulation by default on every TPU
    generation (the x**4 is always computed in f32).
    """
    n, d_in = x.shape
    h_dim, d_in_w = w1.shape
    d_out, h_dim_w = w2.shape
    assert d_in_w == d_in and h_dim_w == h_dim

    cdt = jnp.dtype(compute_dtype)
    odt = jnp.dtype(x.dtype)
    xdt = jnp.dtype(x.dtype)

    # ---- lane-dense padding targets (128-lane vreg width) --------------------
    d_in_p = _round_up(d_in, 128)
    h_p = _round_up(h_dim, 128)
    d_out_p0 = _round_up(d_out, 128)

    # ---- generation-aware VMEM budget drives the tile plan -------------------
    cap = _vmem_capacity_bytes()
    budget = int(0.80 * cap)
    tile_n, tile_no, n_col, plan_b = _choose_plan(
        n, d_in_p, h_p, d_out_p0, xdt.itemsize, odt.itemsize, cdt.itemsize,
        row_tile, budget)

    d_out_p = tile_no * n_col
    n_p = _round_up(n, tile_n)
    grid = (n_p // tile_n, n_col)

    # ---- operands -------------------------------------------------------------
    # x: keep original dtype (in-kernel cast); pad only if the shape needs it.
    if (n_p, d_in_p) == (n, d_in):
        x_in = x
    else:
        x_in = jnp.pad(x, ((0, n_p - n), (0, d_in_p - d_in)))
    # Weights: small slabs -> pad + pre-transpose + cast once in the wrapper.
    # Zero padding contributes exactly 0 to every dot product and to x**4.
    w1t_p = jnp.pad(w1.T, ((0, d_in_p - d_in), (0, h_p - h_dim))).astype(cdt)
    w2t_p = jnp.pad(w2.T, ((0, h_p - h_dim), (0, d_out_p - d_out))).astype(cdt)

    vmem_limit = int(min(cap, max(budget, 32 * 1024 * 1024)))

    per_block_flops = (2 * tile_n * d_in_p * h_p      # first matmul
                       + 3 * tile_n * h_p             # x**4 (2 muls + cast)
                       + 2 * tile_n * h_p * tile_no)  # second matmul
    cost = pl.CostEstimate(
        flops=int(grid[0] * grid[1] * per_block_flops),
        transcendentals=0,
        bytes_accessed=int(x_in.size * xdt.itemsize
                           + w1t_p.size * cdt.itemsize
                           + w2t_p.size * cdt.itemsize
                           + n_p * d_out_p * odt.itemsize),
    )

    def build_call(single_buffer_weights):
        # Constant-index weight slabs are DMA'd once -> single-buffer them.
        pm_w1 = {"pipeline_mode": pl.Buffered(1)} if single_buffer_weights else {}
        pm_w2 = ({"pipeline_mode": pl.Buffered(1)}
                 if (single_buffer_weights and n_col == 1) else {})
        return pl.pallas_call(
            fourth_order_kernel,
            out_shape=jax.ShapeDtypeStruct((n_p, d_out_p), odt),
            grid_spec=pltpu.PrefetchScalarGridSpec(
                num_scalar_prefetch=0,
                grid=grid,
                in_specs=[
                    # Row tile of activations: pipelined across the row axis.
                    pl.BlockSpec((tile_n, d_in_p), lambda i, j: (i, 0)),
                    # W1^T: resident across the whole grid.
                    pl.BlockSpec((d_in_p, h_p), lambda i, j: (0, 0), **pm_w1),
                    # W2^T: resident (n_col==1) or blocked along output columns.
                    pl.BlockSpec((h_p, tile_no), lambda i, j: (0, j), **pm_w2),
                ],
                out_specs=pl.BlockSpec((tile_n, tile_no), lambda i, j: (i, j)),
            ),
            compiler_params=pltpu.CompilerParams(
                # Row tiles shard across v7x's two TensorCores; the column axis
                # (usually size 1) is sequential.
                dimension_semantics=("parallel", "arbitrary"),
                vmem_limit_bytes=vmem_limit,
            ),
            cost_estimate=cost,
        )

    try:
        y_p = build_call(True)(x_in, w1t_p, w2t_p)
    except Exception:
        # TODO(synk): drop this fallback once pl.Buffered(1) single-buffering of
        # resident weight slabs is confirmed on the target jaxlib.
        y_p = build_call(False)(x_in, w1t_p, w2t_p)

    # Strip row / lane padding.
    return y_p[:n, :d_out]


def _rel_err(a, b):
    a = jnp.asarray(a, jnp.float32)
    b = jnp.asarray(b, jnp.float32)
    return float(jnp.linalg.norm(a - b) / (jnp.linalg.norm(b) + 1e-30))


if __name__ == "__main__":
    key = jax.random.PRNGKey(0)

    def make_case(key, n, d_in, h, d_out):
        kx, k1, k2 = jax.random.split(key, 3)
        x = jax.random.normal(kx, (n, d_in), dtype=jnp.float32)
        # nn.Linear(bias=False) init: uniform(-1/sqrt(fan_in), 1/sqrt(fan_in))
        b1 = 1.0 / jnp.sqrt(jnp.float32(d_in))
        b2 = 1.0 / jnp.sqrt(jnp.float32(h))
        w1 = jax.random.uniform(k1, (h, d_in), jnp.float32, minval=-b1, maxval=b1)
        w2 = jax.random.uniform(k2, (d_out, h), jnp.float32, minval=-b2, maxval=b2)
        return x, w1, w2

    k_small, k_big = jax.random.split(key)

    # Small case: module-native shapes (D_in=32, H=32, D_out=16, batch=8).
    # Bigger case: exercises row padding and a >=2-step pipelined row grid.
    cases = [make_case(k_small, 8, 32, 32, 16),
             make_case(k_big, 300, 64, 96, 48)]

    for x, w1, w2 in cases:
        # Reference: exact PyTorch forward semantics (x**4; tanh unused).
        y_ref = ((x @ w1.T) ** 4) @ w2.T

        # f32 MXU operands: tight-tolerance check.
        y_f32 = fourth_order_net(x, w1, w2, compute_dtype=jnp.float32)
        jax.block_until_ready(y_f32)
        assert y_f32.shape == y_ref.shape
        assert _rel_err(y_f32, y_ref) < 1e-4

        # bf16 MXU operands (default fast path on all generations), f32
        # accumulation + f32 x**4; error compounds through the 4th power, so
        # the tolerance here is intentionally loose.
        y_bf16 = fourth_order_net(x, w1, w2, compute_dtype=jnp.bfloat16)
        jax.block_until_ready(y_bf16)
        assert y_bf16.shape == y_ref.shape
        assert _rel_err(y_bf16, y_ref) < 5e-2

    print("KERNEL_OK")
</pallas_src>

<mosaic_0001>
module attributes {stable_mosaic.version = 11 : i64} {
  func.func @fourth_order_kernel(%arg0: i32, %arg1: i32, %arg2: memref<16x128xf32, #tpu.memory_space<vmem>>, %arg3: memref<128x128xf32, #tpu.memory_space<vmem>>, %arg4: memref<128x128xf32, #tpu.memory_space<vmem>>, %arg5: memref<16x128xf32, #tpu.memory_space<vmem>>) attributes {dimension_semantics = [#tpu.dimension_semantics<parallel>, #tpu.dimension_semantics<arbitrary>], iteration_bounds = array<i64: 1, 1>, scalar_prefetch = 0 : i64, scratch_operands = 0 : i64, tpu.core_type = #tpu.core_type<tc>, window_params = [{transform_indices = @transform_0, window_bounds = array<i64: 16, 128>}, {pipeline_mode = #tpu.pipeline_mode<synchronous>, transform_indices = @transform_1, window_bounds = array<i64: 128, 128>}, {pipeline_mode = #tpu.pipeline_mode<synchronous>, transform_indices = @transform_2, window_bounds = array<i64: 128, 128>}, {transform_indices = @transform_3, window_bounds = array<i64: 16, 128>}]} {
    %c0 = arith.constant 0 : index
    %c0_0 = arith.constant 0 : index
    %0 = vector.load %arg2[%c0, %c0_0] : memref<16x128xf32, #tpu.memory_space<vmem>>, vector<16x128xf32>
    %c0_1 = arith.constant 0 : index
    %c0_2 = arith.constant 0 : index
    %1 = vector.load %arg3[%c0_1, %c0_2] : memref<128x128xf32, #tpu.memory_space<vmem>>, vector<128x128xf32>
    %cst = arith.constant dense<0.000000e+00> : vector<16x128xf32>
    %2 = tpu.matmul %0, %1, %cst {dimension_numbers = #tpu.dot_dimension_numbers<[1], [0], [0], [1], [0, 0, 1, 1], [], []>} : vector<16x128xf32>, vector<128x128xf32>, vector<16x128xf32> -> vector<16x128xf32>
    %3 = arith.mulf %2, %2 : vector<16x128xf32>
    %4 = arith.mulf %3, %3 : vector<16x128xf32>
    %c0_3 = arith.constant 0 : index
    %c0_4 = arith.constant 0 : index
    %5 = vector.load %arg4[%c0_3, %c0_4] : memref<128x128xf32, #tpu.memory_space<vmem>>, vector<128x128xf32>
    %cst_5 = arith.constant dense<0.000000e+00> : vector<16x128xf32>
    %6 = tpu.matmul %4, %5, %cst_5 {dimension_numbers = #tpu.dot_dimension_numbers<[1], [0], [0], [1], [0, 0, 1, 1], [], []>} : vector<16x128xf32>, vector<128x128xf32>, vector<16x128xf32> -> vector<16x128xf32>
    %c0_6 = arith.constant 0 : index
    %c0_7 = arith.constant 0 : index
    %7 = vector.load %arg5[%c0_6, %c0_7] : memref<16x128xf32, #tpu.memory_space<vmem>>, vector<16x128xf32>
    tpu.vector_store %arg5[%c0_6, %c0_7], %6 {strides = array<i32>} : memref<16x128xf32, #tpu.memory_space<vmem>>, vector<16x128xf32>,
    return
  }
  func.func @transform_0(%arg0: i32, %arg1: i32) -> (i32, i32) {
    %c0_i32 = arith.constant 0 : i32
    %c0_i32_0 = arith.constant 0 : i32
    return %arg0, %c0_i32 : i32, i32
  }
  func.func @transform_1(%arg0: i32, %arg1: i32) -> (i32, i32) {
    %c0_i32 = arith.constant 0 : i32
    %c0_i32_0 = arith.constant 0 : i32
    %c0_i32_1 = arith.constant 0 : i32
    return %c0_i32, %c0_i32_0 : i32, i32
  }
  func.func @transform_2(%arg0: i32, %arg1: i32) -> (i32, i32) {
    %c0_i32 = arith.constant 0 : i32
    %c0_i32_0 = arith.constant 0 : i32
    return %c0_i32, %arg1 : i32, i32
  }
  func.func @transform_3(%arg0: i32, %arg1: i32) -> (i32, i32) {
    %c0_i32 = arith.constant 0 : i32
    return %arg0, %arg1 : i32, i32
  }
}

module attributes {stable_mosaic.version = 11 : i64} {
  func.func @fourth_order_kernel(%arg0: i32, %arg1: i32, %arg2: memref<16x128xf32, #tpu.memory_space<vmem>>, %arg3: memref<128x128xf32, #tpu.memory_space<vmem>>, %arg4: memref<128x128xf32, #tpu.memory_space<vmem>>, %arg5: memref<16x128xf32, #tpu.memory_space<vmem>>) attributes {dimension_semantics = [#tpu.dimension_semantics<parallel>, #tpu.dimension_semantics<arbitrary>], iteration_bounds = array<i64: 1, 1>, scalar_prefetch = 0 : i64, scratch_operands = 0 : i64, tpu.core_type = #tpu.core_type<tc>, window_params = [{transform_indices = @transform_0, window_bounds = array<i64: 16, 128>}, {pipeline_mode = #tpu.pipeline_mode<synchronous>, transform_indices = @transform_1, window_bounds = array<i64: 128, 128>}, {transform_indices = @transform_2, window_bounds = array<i64: 128, 128>}, {transform_indices = @transform_3, window_bounds = array<i64: 16, 128>}]} {
    %c0 = arith.constant 0 : index
    %c0_0 = arith.constant 0 : index
    %0 = vector.load %arg2[%c0, %c0_0] : memref<16x128xf32, #tpu.memory_space<vmem>>, vector<16x128xf32>
    %c0_1 = arith.constant 0 : index
    %c0_2 = arith.constant 0 : index
    %1 = vector.load %arg3[%c0_1, %c0_2] : memref<128x128xf32, #tpu.memory_space<vmem>>, vector<128x128xf32>
    %cst = arith.constant dense<0.000000e+00> : vector<16x128xf32>
    %2 = tpu.matmul %0, %1, %cst {dimension_numbers = #tpu.dot_dimension_numbers<[1], [0], [0], [1], [0, 0, 1, 1], [], []>} : vector<16x128xf32>, vector<128x128xf32>, vector<16x128xf32> -> vector<16x128xf32>
    %3 = arith.mulf %2, %2 : vector<16x128xf32>
    %4 = arith.mulf %3, %3 : vector<16x128xf32>
    %c0_3 = arith.constant 0 : index
    %c0_4 = arith.constant 0 : index
    %5 = vector.load %arg4[%c0_3, %c0_4] : memref<128x128xf32, #tpu.memory_space<vmem>>, vector<128x128xf32>
    %cst_5 = arith.constant dense<0.000000e+00> : vector<16x128xf32>
    %6 = tpu.matmul %4, %5, %cst_5 {dimension_numbers = #tpu.dot_dimension_numbers<[1], [0], [0], [1], [0, 0, 1, 1], [], []>} : vector<16x128xf32>, vector<128x128xf32>, vector<16x128xf32> -> vector<16x128xf32>
    %c0_6 = arith.constant 0 : index
    %c0_7 = arith.constant 0 : index
    %7 = vector.load %arg5[%c0_6, %c0_7] : memref<16x128xf32, #tpu.memory_space<vmem>>, vector<16x128xf32>
    tpu.vector_store %arg5[%c0_6, %c0_7], %6 {strides = array<i32>} : memref<16x128xf32, #tpu.memory_space<vmem>>, vector<16x128xf32>,
    return
  }
  func.func @transform_0(%arg0: i32, %arg1: i32) -> (i32, i32) {
    %c0_i32 = arith.constant 0 : i32
    %c0_i32_0 = arith.constant 0 : i32
    return %arg0, %c0_i32 : i32, i32
  }
  func.func @transform_1(%arg0: i32, %arg1: i32) -> (i32, i32) {
    %c0_i32 = arith.constant 0 : i32
    %c0_i32_0 = arith.constant 0 : i32
    %c0_i32_1 = arith.constant 0 : i32
    return %c0_i32, %c0_i32_0 : i32, i32
  }
  func.func @transform_2(%arg0: i32, %arg1: i32) -> (i32, i32) {
    %c0_i32 = arith.constant 0 : i32
    %c0_i32_0 = arith.constant 0 : i32
    return %c0_i32, %arg1 : i32, i32
  }
  func.func @transform_3(%arg0: i32, %arg1: i32) -> (i32, i32) {
    %c0_i32 = arith.constant 0 : i32
    return %arg0, %arg1 : i32, i32
  }
}

</mosaic_0001>

<bundles_post_ra>
// kernel: tpu_custom_call.1
= control target key start
LH: loop header
LB: loop body
LE: loop exit
PB: predicated region body
PF: predicated region fallthrough
CT: control target
= control target key end

     0   :  { %8 = vsyncpa [#allocation3], 0  ;;  %s358_s0 = inlined_call_operand.hbm [shape: f32[16,128], index: 0, kind: input, shape index: {}]   ;;  %s359_s1 = inlined_call_operand.hbm [shape: f32[128,128], index: 1, kind: input, shape index: {}]   ;;  %s360_s2 = inlined_call_operand.hbm [shape: f32[128,128], index: 2, kind: input, shape index: {}]   ;;  %s361_s3 = inlined_call_operand.hbm [shape: f32[16,128], index: 3, kind: output, shape index: {}]  }
   0x1   :  { %9 = vsyncpa [#allocation6], 0 }
   0x2   :  { %10 = vsyncpa [#allocation4], 0  ;;  %s28_s14 = sshll.u32 %s359_s1, 4  ;;  %s308_s15 = smov [#allocation5]   ;;  %s29_s14 = int_to_ptr.hbm [resolvable:$true] %s28_s14 }
   0x3   :  { %s30_s16 = sshll.u32 %s308_s15, 4  ;;  %s15_s19 = sshll.u32 %s358_s0, 4  ;;  %s31_s16 = int_to_ptr.vmem [resolvable:$true] %s30_s16  ;;  %s16_s19 = int_to_ptr.hbm [resolvable:$true] %s15_s19 }
   0x4   :  { %s309_s20 = smov 128   ;;  %s310_s21 = smov 8  }
   0x5   :  { %36 = dma.hbm_to_vmem [thread:$0]  %s29_s14, 2048, %s31_s16, [#allocation6], %s309_s20, %s309_s20, %s310_s21  }
   0x6   :  { %s311_s22 = smov [#allocation2]   ;;  %s41_s1 = sshll.u32 %s360_s2, 4  ;;  %s42_s1 = int_to_ptr.hbm [resolvable:$true] %s41_s1 }
   0x7   :  { %s17_s23 = sshll.u32 %s311_s22, 4  ;;  %s312_s0 = smov [#allocation7]   ;;  %s18_s23 = int_to_ptr.vmem [resolvable:$true] %s17_s23 }
   0x8   :  { %23 = dma.hbm_to_vmem [thread:$0]  %s16_s19, 256, %s18_s23, [#allocation3], %s309_s20, %s309_s20, %s310_s21  }
   0x9   :  { %s43_s26 = sshll.u32 %s312_s0, 4  ;;  %s44_s26 = int_to_ptr.vmem [resolvable:$true] %s43_s26 }
   0xa   :  { %49 = dma.hbm_to_vmem [thread:$0]  %s42_s1, 2048, %s44_s26, [#allocation6], %s309_s20, %s309_s20, %s310_s21  }
   0xb   :  { %302 = dma.done.wait [#allocation3], 256  }
   0xc   :  { %303 = vsyncadd [#allocation3], 4294967040 }
   0xd   :  { %304 = dma.done.wait [#allocation6], 4096  }
   0xe   :  { %305 = vsyncadd [#allocation6], 4294963200  ;;  %v79_v0 = vld [vmem:[#allocation5 + $0x78] sm:$0xff]  ;;  %v78_v1 = vld [vmem:[#allocation5 + $0x70] sm:$0xff]  ;;  %s313_s2 = smov [#allocation8]   ;;  %s154_s30 = sshll.u32 %s361_s3, 4  ;;  %s155_s30 = int_to_ptr.hbm [resolvable:$true] %s154_s30 }
   0xf   :  { %168 = vmatpush.msra.mxu2 %v79_v0  ;;  %80 = vmatpush.msra.mxu0 %v79_v0  ;;  %v77_v2 = vld [vmem:[#allocation5 + $0x68] sm:$0xff]  ;;  %v76_v3 = vld [vmem:[#allocation5 + $0x60] sm:$0xff]  ;;  %v75_v4 = vld [vmem:[#allocation5 + $0x58] sm:$0xff]  ;;  %s152_s27 = sshll.u32 %s313_s2, 4  ;;  %s153_s27 = int_to_ptr.vmem [resolvable:$true] %s152_s27 }
  0x10   :  { %v122_v5 = vld [vmem:[#allocation7 + $0x78] sm:$0xff]  ;;  %v121_v6 = vld [vmem:[#allocation7 + $0x70] sm:$0xff]  ;;  %v120_v8 = vld [vmem:[#allocation7 + $0x68] sm:$0xff] }
  0x11   :  { %169 = vmatpush.msra.mxu2 %v78_v1  ;;  %81 = vmatpush.msra.mxu0 %v78_v1  ;;  %v74_v7 = vld [vmem:[#allocation5 + $0x50] sm:$0xff]  ;;  %v73_v9 = vld [vmem:[#allocation5 + $0x48] sm:$0xff]  ;;  %v119_v10 = vld [vmem:[#allocation7 + $0x60] sm:$0xff] }
  0x12   :  { %184 = vmatpush.msra.mxu3 %v122_v5  ;;  %123 = vmatpush.msra.mxu1 %v122_v5  ;;  %v72_v11 = vld [vmem:[#allocation5 + $0x40] sm:$0xff]  ;;  %v118_v12 = vld [vmem:[#allocation7 + $0x58] sm:$0xff]  ;;  %v117_v14 = vld [vmem:[#allocation7 + $0x50] sm:$0xff] }
  0x13   :  { %170 = vmatpush.msra.mxu2 %v77_v2  ;;  %82 = vmatpush.msra.mxu0 %v77_v2  ;;  %v71_v13 = vld [vmem:[#allocation5 + $0x38] sm:$0xff]  ;;  %v70_v15 = vld [vmem:[#allocation5 + $0x30] sm:$0xff]  ;;  %v116_v16 = vld [vmem:[#allocation7 + $0x48] sm:$0xff] }
  0x14   :  { %185 = vmatpush.msra.mxu3 %v121_v6  ;;  %124 = vmatpush.msra.mxu1 %v121_v6  ;;  %v69_v17 = vld [vmem:[#allocation5 + $0x28] sm:$0xff]  ;;  %v115_v18 = vld [vmem:[#allocation7 + $0x40] sm:$0xff]  ;;  %v114_v20 = vld [vmem:[#allocation7 + $0x38] sm:$0xff] }
  0x15   :  { %171 = vmatpush.msra.mxu2 %v76_v3  ;;  %83 = vmatpush.msra.mxu0 %v76_v3  ;;  %v68_v19 = vld [vmem:[#allocation5 + $0x20] sm:$0xff]  ;;  %v67_v21 = vld [vmem:[#allocation5 + $0x18] sm:$0xff]  ;;  %v113_v22 = vld [vmem:[#allocation7 + $0x30] sm:$0xff] }
  0x16   :  { %186 = vmatpush.msra.mxu3 %v120_v8  ;;  %125 = vmatpush.msra.mxu1 %v120_v8  ;;  %v66_v23 = vld [vmem:[#allocation5 + $0x10] sm:$0xff]  ;;  %v112_v24 = vld [vmem:[#allocation7 + $0x28] sm:$0xff]  ;;  %v111_v26 = vld [vmem:[#allocation7 + $0x20] sm:$0xff] }
  0x17   :  { %172 = vmatpush.msra.mxu2 %v75_v4  ;;  %84 = vmatpush.msra.mxu0 %v75_v4  ;;  %v65_v25 = vld [vmem:[#allocation5 + $0x8] sm:$0xff]  ;;  %v64_v27 = vld [vmem:[#allocation5] sm:$0xff]  ;;  %v63_v28 = vld [vmem:[#allocation2 + $0x8] sm:$0xff] }
  0x18   :  { %187 = vmatpush.msra.mxu3 %v119_v10  ;;  %126 = vmatpush.msra.mxu1 %v119_v10  ;;  %v62_v29 = vld [vmem:[#allocation2] sm:$0xff]  ;;  %v110_v30 = vld [vmem:[#allocation7 + $0x18] sm:$0xff]  ;;  %v108_v32 = vld [vmem:[#allocation7 + $0x8] sm:$0xff] }
  0x19   :  { %173 = vmatpush.msra.mxu2 %v74_v7  ;;  %85 = vmatpush.msra.mxu0 %v74_v7  ;;  %v109_v31 = vld [vmem:[#allocation7 + $0x10] sm:$0xff]  ;;  %v107_v33 = vld [vmem:[#allocation7] sm:$0xff] }
  0x1a   :  { %188 = vmatpush.msra.mxu3 %v118_v12  ;;  %127 = vmatpush.msra.mxu1 %v118_v12 }
  0x1b   :  { %174 = vmatpush.msra.mxu2 %v73_v9  ;;  %86 = vmatpush.msra.mxu0 %v73_v9 }
  0x1c   :  { %189 = vmatpush.msra.mxu3 %v117_v14  ;;  %128 = vmatpush.msra.mxu1 %v117_v14 }
  0x1d   :  { %175 = vmatpush.msra.mxu2 %v72_v11  ;;  %87 = vmatpush.msra.mxu0 %v72_v11 }
  0x1e   :  { %190 = vmatpush.msra.mxu3 %v116_v16  ;;  %129 = vmatpush.msra.mxu1 %v116_v16 }
  0x1f   :  { %176 = vmatpush.msra.mxu2 %v71_v13  ;;  %88 = vmatpush.msra.mxu0 %v71_v13 }
  0x20   :  { %191 = vmatpush.msra.mxu3 %v115_v18  ;;  %130 = vmatpush.msra.mxu1 %v115_v18 }
  0x21   :  { %177 = vmatpush.msra.mxu2 %v70_v15  ;;  %89 = vmatpush.msra.mxu0 %v70_v15 }
  0x22   :  { %192 = vmatpush.msra.mxu3 %v114_v20  ;;  %131 = vmatpush.msra.mxu1 %v114_v20 }
  0x23   :  { %178 = vmatpush.msra.mxu2 %v69_v17  ;;  %90 = vmatpush.msra.mxu0 %v69_v17 }
  0x24   :  { %193 = vmatpush.msra.mxu3 %v113_v22  ;;  %132 = vmatpush.msra.mxu1 %v113_v22 }
  0x25   :  { %179 = vmatpush.msra.mxu2 %v68_v19  ;;  %91 = vmatpush.msra.mxu0 %v68_v19 }
  0x26   :  { %194 = vmatpush.msra.mxu3 %v112_v24  ;;  %133 = vmatpush.msra.mxu1 %v112_v24 }
  0x27   :  { %180 = vmatpush.msra.mxu2 %v67_v21  ;;  %92 = vmatpush.msra.mxu0 %v67_v21 }
  0x28   :  { %195 = vmatpush.msra.mxu3 %v111_v26  ;;  %134 = vmatpush.msra.mxu1 %v111_v26 }
  0x29   :  { %181 = vmatpush.msra.mxu2 %v66_v23  ;;  %93 = vmatpush.msra.mxu0 %v66_v23 }
  0x2a   :  { %196 = vmatpush.msra.mxu3 %v110_v30  ;;  %135 = vmatpush.msra.mxu1 %v110_v30 }
  0x2b   :  { %182 = vmatpush.msra.mxu2 %v65_v25  ;;  %94 = vmatpush.msra.mxu0 %v65_v25 }
  0x2c   :  { %197 = vmatpush.msra.mxu3 %v109_v31  ;;  %136 = vmatpush.msra.mxu1 %v109_v31 }
  0x2d   :  { %183 = vmatpush.msra.mxu2 %v64_v27  ;;  %95 = vmatpush.msra.mxu0 %v64_v27 }
  0x2e   :  { %99 = vmatmul.f32.vlgmr.msra.gmra.mxu2 %v63_v28  ;;  %96 = vmatmul.f32.vlgmr.msra.gmra.mxu0 %v62_v29 }
  0x2f   :  { %198 = vmatpush.msra.mxu3 %v108_v32  ;;  %137 = vmatpush.msra.mxu1 %v108_v32 }
  0x31   :  { %199 = vmatpush.msra.mxu3 %v107_v33  ;;  %138 = vmatpush.msra.mxu1 %v107_v33 }
  0xab   :  { %v97_v34 = vpop.f32.mrf.mxu0 }
  0xac   :  { %v103_v35 = vmul.f32 %v97_v34, %v97_v34 }
  0xae   :  { %v105_v36 = vmul.f32 %v103_v35, %v103_v35 }
  0xb0   :  { %139 = vmatmul.f32.vlgmr.msra.gmra.mxu1 %v105_v36 }
  0xb1   :  { %v100_v37 = vpop.f32.mrf.mxu2 }
  0xb2   :  { %v104_v38 = vmul.f32 %v100_v37, %v100_v37 }
  0xb4   :  { %v106_v39 = vmul.f32 %v104_v38, %v104_v38 }
  0xb6   :  { %142 = vmatmul.f32.vlgmr.msra.gmra.mxu3 %v106_v39 }
 0x12d   :  { %v140_v40 = vpop.f32.mrf.mxu1 }
 0x12e   :  { %146 = vst [vmem:[#allocation8] sm:$0xff] %v140_v40 }
 0x139   :  { %v143_v41 = vpop.f32.mrf.mxu3 }
 0x13a   :  { %147 = vst [vmem:[#allocation8 + $0x8] sm:$0xff] %v143_v41 }
 0x13b   :  { %160 = dma.vmem_to_hbm [thread:$0]  %s153_s27, 256, %s155_s30, [#allocation4], %s309_s20, %s309_s20, %s310_s21  }
 0x13c   :  { %306 = dma.done.wait [#allocation4], 256  }
 0x13d   :  { %307 = vsyncadd [#allocation4], 4294967040 }
 0x13e   :  { %165 = vsyncpa [#allocation3], 1 }
 0x13f   :  { %166 = vsyncpa [#allocation6], 1 }
 0x140   :  { %167 = vsyncpa [#allocation4], 1 }

// kernel: tpu_custom_call.1
= control target key start
LH: loop header
LB: loop body
LE: loop exit
PB: predicated region body
PF: predicated region fallthrough
CT: control target
= control target key end

     0   :  { %8 = vsyncpa [#allocation3], 0  ;;  %s358_s0 = inlined_call_operand.hbm [shape: f32[16,128], index: 0, kind: input, shape index: {}]   ;;  %s359_s1 = inlined_call_operand.hbm [shape: f32[128,128], index: 1, kind: input, shape index: {}]   ;;  %s360_s2 = inlined_call_operand.hbm [shape: f32[128,128], index: 2, kind: input, shape index: {}]   ;;  %s361_s3 = inlined_call_operand.hbm [shape: f32[16,128], index: 3, kind: output, shape index: {}]  }
   0x1   :  { %9 = vsyncpa [#allocation6], 0 }
   0x2   :  { %10 = vsyncpa [#allocation4], 0  ;;  %s28_s14 = sshll.u32 %s359_s1, 4  ;;  %s308_s15 = smov [#allocation5]   ;;  %s29_s14 = int_to_ptr.hbm [resolvable:$true] %s28_s14 }
   0x3   :  { %s30_s16 = sshll.u32 %s308_s15, 4  ;;  %s15_s19 = sshll.u32 %s358_s0, 4  ;;  %s31_s16 = int_to_ptr.vmem [resolvable:$true] %s30_s16  ;;  %s16_s19 = int_to_ptr.hbm [resolvable:$true] %s15_s19 }
   0x4   :  { %s309_s20 = smov 128   ;;  %s310_s21 = smov 8  }
   0x5   :  { %36 = dma.hbm_to_vmem [thread:$0]  %s29_s14, 2048, %s31_s16, [#allocation6], %s309_s20, %s309_s20, %s310_s21  }
   0x6   :  { %s311_s22 = smov [#allocation2]   ;;  %s41_s1 = sshll.u32 %s360_s2, 4  ;;  %s42_s1 = int_to_ptr.hbm [resolvable:$true] %s41_s1 }
   0x7   :  { %s17_s23 = sshll.u32 %s311_s22, 4  ;;  %s312_s0 = smov [#allocation7]   ;;  %s18_s23 = int_to_ptr.vmem [resolvable:$true] %s17_s23 }
   0x8   :  { %23 = dma.hbm_to_vmem [thread:$0]  %s16_s19, 256, %s18_s23, [#allocation3], %s309_s20, %s309_s20, %s310_s21  }
   0x9   :  { %s43_s26 = sshll.u32 %s312_s0, 4  ;;  %s44_s26 = int_to_ptr.vmem [resolvable:$true] %s43_s26 }
   0xa   :  { %49 = dma.hbm_to_vmem [thread:$0]  %s42_s1, 2048, %s44_s26, [#allocation6], %s309_s20, %s309_s20, %s310_s21  }
   0xb   :  { %302 = dma.done.wait [#allocation3], 256  }
   0xc   :  { %303 = vsyncadd [#allocation3], 4294967040 }
   0xd   :  { %304 = dma.done.wait [#allocation6], 4096  }
   0xe   :  { %305 = vsyncadd [#allocation6], 4294963200  ;;  %v79_v0 = vld [vmem:[#allocation5 + $0x78] sm:$0xff]  ;;  %v78_v1 = vld [vmem:[#allocation5 + $0x70] sm:$0xff]  ;;  %s313_s2 = smov [#allocation8]   ;;  %s154_s30 = sshll.u32 %s361_s3, 4  ;;  %s155_s30 = int_to_ptr.hbm [resolvable:$true] %s154_s30 }
   0xf   :  { %168 = vmatpush.msra.mxu2 %v79_v0  ;;  %80 = vmatpush.msra.mxu0 %v79_v0  ;;  %v77_v2 = vld [vmem:[#allocation5 + $0x68] sm:$0xff]  ;;  %v76_v3 = vld [vmem:[#allocation5 + $0x60] sm:$0xff]  ;;  %v75_v4 = vld [vmem:[#allocation5 + $0x58] sm:$0xff]  ;;  %s152_s27 = sshll.u32 %s313_s2, 4  ;;  %s153_s27 = int_to_ptr.vmem [resolvable:$true] %s152_s27 }
  0x10   :  { %v122_v5 = vld [vmem:[#allocation7 + $0x78] sm:$0xff]  ;;  %v121_v6 = vld [vmem:[#allocation7 + $0x70] sm:$0xff]  ;;  %v120_v8 = vld [vmem:[#allocation7 + $0x68] sm:$0xff] }
  0x11   :  { %169 = vmatpush.msra.mxu2 %v78_v1  ;;  %81 = vmatpush.msra.mxu0 %v78_v1  ;;  %v74_v7 = vld [vmem:[#allocation5 + $0x50] sm:$0xff]  ;;  %v73_v9 = vld [vmem:[#allocation5 + $0x48] sm:$0xff]  ;;  %v119_v10 = vld [vmem:[#allocation7 + $0x60] sm:$0xff] }
  0x12   :  { %184 = vmatpush.msra.mxu3 %v122_v5  ;;  %123 = vmatpush.msra.mxu1 %v122_v5  ;;  %v72_v11 = vld [vmem:[#allocation5 + $0x40] sm:$0xff]  ;;  %v118_v12 = vld [vmem:[#allocation7 + $0x58] sm:$0xff]  ;;  %v117_v14 = vld [vmem:[#allocation7 + $0x50] sm:$0xff] }
  0x13   :  { %170 = vmatpush.msra.mxu2 %v77_v2  ;;  %82 = vmatpush.msra.mxu0 %v77_v2  ;;  %v71_v13 = vld [vmem:[#allocation5 + $0x38] sm:$0xff]  ;;  %v70_v15 = vld [vmem:[#allocation5 + $0x30] sm:$0xff]  ;;  %v116_v16 = vld [vmem:[#allocation7 + $0x48] sm:$0xff] }
  0x14   :  { %185 = vmatpush.msra.mxu3 %v121_v6  ;;  %124 = vmatpush.msra.mxu1 %v121_v6  ;;  %v69_v17 = vld [vmem:[#allocation5 + $0x28] sm:$0xff]  ;;  %v115_v18 = vld [vmem:[#allocation7 + $0x40] sm:$0xff]  ;;  %v114_v20 = vld [vmem:[#allocation7 + $0x38] sm:$0xff] }
  0x15   :  { %171 = vmatpush.msra.mxu2 %v76_v3  ;;  %83 = vmatpush.msra.mxu0 %v76_v3  ;;  %v68_v19 = vld [vmem:[#allocation5 + $0x20] sm:$0xff]  ;;  %v67_v21 = vld [vmem:[#allocation5 + $0x18] sm:$0xff]  ;;  %v113_v22 = vld [vmem:[#allocation7 + $0x30] sm:$0xff] }
  0x16   :  { %186 = vmatpush.msra.mxu3 %v120_v8  ;;  %125 = vmatpush.msra.mxu1 %v120_v8  ;;  %v66_v23 = vld [vmem:[#allocation5 + $0x10] sm:$0xff]  ;;  %v112_v24 = vld [vmem:[#allocation7 + $0x28] sm:$0xff]  ;;  %v111_v26 = vld [vmem:[#allocation7 + $0x20] sm:$0xff] }
  0x17   :  { %172 = vmatpush.msra.mxu2 %v75_v4  ;;  %84 = vmatpush.msra.mxu0 %v75_v4  ;;  %v65_v25 = vld [vmem:[#allocation5 + $0x8] sm:$0xff]  ;;  %v64_v27 = vld [vmem:[#allocation5] sm:$0xff]  ;;  %v63_v28 = vld [vmem:[#allocation2 + $0x8] sm:$0xff] }
  0x18   :  { %187 = vmatpush.msra.mxu3 %v119_v10  ;;  %126 = vmatpush.msra.mxu1 %v119_v10  ;;  %v62_v29 = vld [vmem:[#allocation2] sm:$0xff]  ;;  %v110_v30 = vld [vmem:[#allocation7 + $0x18] sm:$0xff]  ;;  %v108_v32 = vld [vmem:[#allocation7 + $0x8] sm:$0xff] }
  0x19   :  { %173 = vmatpush.msra.mxu2 %v74_v7  ;;  %85 = vmatpush.msra.mxu0 %v74_v7  ;;  %v109_v31 = vld [vmem:[#allocation7 + $0x10] sm:$0xff]  ;;  %v107_v33 = vld [vmem:[#allocation7] sm:$0xff] }
  0x1a   :  { %188 = vmatpush.msra.mxu3 %v118_v12  ;;  %127 = vmatpush.msra.mxu1 %v118_v12 }
  0x1b   :  { %174 = vmatpush.msra.mxu2 %v73_v9  ;;  %86 = vmatpush.msra.mxu0 %v73_v9 }
  0x1c   :  { %189 = vmatpush.msra.mxu3 %v117_v14  ;;  %128 = vmatpush.msra.mxu1 %v117_v14 }
  0x1d   :  { %175 = vmatpush.msra.mxu2 %v72_v11  ;;  %87 = vmatpush.msra.mxu0 %v72_v11 }
  0x1e   :  { %190 = vmatpush.msra.mxu3 %v116_v16  ;;  %129 = vmatpush.msra.mxu1 %v116_v16 }
  0x1f   :  { %176 = vmatpush.msra.mxu2 %v71_v13  ;;  %88 = vmatpush.msra.mxu0 %v71_v13 }
  0x20   :  { %191 = vmatpush.msra.mxu3 %v115_v18  ;;  %130 = vmatpush.msra.mxu1 %v115_v18 }
  0x21   :  { %177 = vmatpush.msra.mxu2 %v70_v15  ;;  %89 = vmatpush.msra.mxu0 %v70_v15 }
  0x22   :  { %192 = vmatpush.msra.mxu3 %v114_v20  ;;  %131 = vmatpush.msra.mxu1 %v114_v20 }
  0x23   :  { %178 = vmatpush.msra.mxu2 %v69_v17  ;;  %90 = vmatpush.msra.mxu0 %v69_v17 }
  0x24   :  { %193 = vmatpush.msra.mxu3 %v113_v22  ;;  %132 = vmatpush.msra.mxu1 %v113_v22 }
  0x25   :  { %179 = vmatpush.msra.mxu2 %v68_v19  ;;  %91 = vmatpush.msra.mxu0 %v68_v19 }
  0x26   :  { %194 = vmatpush.msra.mxu3 %v112_v24  ;;  %133 = vmatpush.msra.mxu1 %v112_v24 }
  0x27   :  { %180 = vmatpush.msra.mxu2 %v67_v21  ;;  %92 = vmatpush.msra.mxu0 %v67_v21 }
  0x28   :  { %195 = vmatpush.msra.mxu3 %v111_v26  ;;  %134 = vmatpush.msra.mxu1 %v111_v26 }
  0x29   :  { %181 = vmatpush.msra.mxu2 %v66_v23  ;;  %93 = vmatpush.msra.mxu0 %v66_v23 }
  0x2a   :  { %196 = vmatpush.msra.mxu3 %v110_v30  ;;  %135 = vmatpush.msra.mxu1 %v110_v30 }
  0x2b   :  { %182 = vmatpush.msra.mxu2 %v65_v25  ;;  %94 = vmatpush.msra.mxu0 %v65_v25 }
  0x2c   :  { %197 = vmatpush.msra.mxu3 %v109_v31  ;;  %136 = vmatpush.msra.mxu1 %v109_v31 }
  0x2d   :  { %183 = vmatpush.msra.mxu2 %v64_v27  ;;  %95 = vmatpush.msra.mxu0 %v64_v27 }
  0x2e   :  { %99 = vmatmul.f32.vlgmr.msra.gmra.mxu2 %v63_v28  ;;  %96 = vmatmul.f32.vlgmr.msra.gmra.mxu0 %v62_v29 }
  0x2f   :  { %198 = vmatpush.msra.mxu3 %v108_v32  ;;  %137 = vmatpush.msra.mxu1 %v108_v32 }
  0x31   :  { %199 = vmatpush.msra.mxu3 %v107_v33  ;;  %138 = vmatpush.msra.mxu1 %v107_v33 }
  0xab   :  { %v97_v34 = vpop.f32.mrf.mxu0 }
  0xac   :  { %v103_v35 = vmul.f32 %v97_v34, %v97_v34 }
  0xae   :  { %v105_v36 = vmul.f32 %v103_v35, %v103_v35 }
  0xb0   :  { %139 = vmatmul.f32.vlgmr.msra.gmra.mxu1 %v105_v36 }
  0xb1   :  { %v100_v37 = vpop.f32.mrf.mxu2 }
  0xb2   :  { %v104_v38 = vmul.f32 %v100_v37, %v100_v37 }
  0xb4   :  { %v106_v39 = vmul.f32 %v104_v38, %v104_v38 }
  0xb6   :  { %142 = vmatmul.f32.vlgmr.msra.gmra.mxu3 %v106_v39 }
 0x12d   :  { %v140_v40 = vpop.f32.mrf.mxu1 }
 0x12e   :  { %146 = vst [vmem:[#allocation8] sm:$0xff] %v140_v40 }
 0x139   :  { %v143_v41 = vpop.f32.mrf.mxu3 }
 0x13a   :  { %147 = vst [vmem:[#allocation8 + $0x8] sm:$0xff] %v143_v41 }
 0x13b   :  { %160 = dma.vmem_to_hbm [thread:$0]  %s153_s27, 256, %s155_s30, [#allocation4], %s309_s20, %s309_s20, %s310_s21  }
 0x13c   :  { %306 = dma.done.wait [#allocation4], 256  }
 0x13d   :  { %307 = vsyncadd [#allocation4], 4294967040 }
 0x13e   :  { %165 = vsyncpa [#allocation3], 1 }
 0x13f   :  { %166 = vsyncpa [#allocation6], 1 }
 0x140   :  { %167 = vsyncpa [#allocation4], 1 }

</bundles_post_ra>
